<compile_context>
chip_gen: v5e
topology: v5e:2x2
jax: 0.10.0
libtpu: 0.0.40
codegen_flags: <defaults>
</compile_context>

<pallas_src>
import functools
import math

import jax
import jax.numpy as jnp
import numpy as np
from jax.experimental import pallas as pl
from jax.experimental.pallas import tpu as pltpu


# ----------------------------------------------------------------------------
# Pallas kernel: one encoder layer for one batch element per grid step
# ----------------------------------------------------------------------------
def encoder_kernel(x_ref, wq_ref, wk_ref, wv_ref, wo_ref,
                   g1_ref, b1_ref, w1_ref, c1_ref, w2_ref, c2_ref,
                   g2_ref, b2_ref, out_ref,
                   *, seq, num_heads, head_dim, eps):
    S, H, E = seq, num_heads, head_dim
    D = x_ref.shape[2]

    x = x_ref[0]                                                      # (S, D) fp32
    xh = jnp.broadcast_to(x, (H, S, D))                               # head-batched view

    # ---- head-batched Q/K/V projections (one batched dot_general each) ------
    q = jnp.einsum('hsd,hde->hse', xh, wq_ref[...],
                   preferred_element_type=jnp.float32)                # (H, S, E)
    k = jnp.einsum('hsd,hde->hse', xh, wk_ref[...],
                   preferred_element_type=jnp.float32)                # (H, S, E)
    v = jnp.einsum('hsd,hde->hse', xh, wv_ref[...],
                   preferred_element_type=jnp.float32)                # (H, S, E)

    # ---- head-batched scaled-dot-product attention ---------------------------
    scale = 1.0 / math.sqrt(float(E))
    s = jnp.einsum('hqe,hke->hqk', q, k,
                   preferred_element_type=jnp.float32) * scale        # (H, S, S)
    s = s - jnp.max(s, axis=-1, keepdims=True)
    p = jnp.exp(s)
    denom = jnp.sum(p, axis=-1, keepdims=True)                        # (H, S, 1)
    ctx = jnp.einsum('hqk,hke->hqe', p, v,
                     preferred_element_type=jnp.float32)              # (H, S, E)
    ctx = ctx / denom            # normalize AFTER the PV matmul (exact divide)

    # ---- output projection: per-head (E, D) matmuls, summed over heads -------
    zh = jnp.einsum('hqe,hed->hqd', ctx, wo_ref[...],
                    preferred_element_type=jnp.float32)               # (H, S, D)
    z = jnp.sum(zh, axis=0)                                           # (S, D)

    def layernorm(y, gamma, beta):
        mu = jnp.mean(y, axis=-1, keepdims=True)
        var = jnp.mean((y - mu) ** 2, axis=-1, keepdims=True)
        return (y - mu) * jax.lax.rsqrt(var + eps) * gamma + beta

    # ---- add & norm 1 ----------------------------------------------------------
    r1 = layernorm(x + z, g1_ref[...], b1_ref[...])                   # (S, D)

    # ---- FFN: dense1 -> swish -> dense2 (dropout = identity in eval mode) -----
    hmid = jnp.dot(r1, w1_ref[...],
                   preferred_element_type=jnp.float32) + c1_ref[...]  # (S, F)
    hmid = hmid * jax.nn.sigmoid(hmid)                                # Swish
    d2 = jnp.dot(hmid, w2_ref[...],
                 preferred_element_type=jnp.float32) + c2_ref[...]    # (S, D)

    # ---- add & norm 2 ----------------------------------------------------------
    out = layernorm(r1 + d2, g2_ref[...], b2_ref[...])
    out_ref[0] = out.astype(out_ref.dtype)


# ----------------------------------------------------------------------------
# Wrapper: grid over batch (parallel axis for v7x), weights VMEM-resident
# ----------------------------------------------------------------------------
def encoder_forward(x, params, *, eps=1e-5, attention_mask=None):
    if attention_mask is not None:
        # TODO(synk): attention_mask (Optional, default None) is not supported.
        raise NotImplementedError("attention_mask is not supported by this kernel")
    # TODO(synk): dropout is identity (inference mode); training dropout not implemented.

    B, S, D = x.shape
    H, _, E = params["wq"].shape
    F = params["w1"].shape[1]

    kernel = functools.partial(encoder_kernel, seq=S, num_heads=H,
                               head_dim=E, eps=eps)

    def resident(shape):
        # Full-array block with a constant index_map -> stays in VMEM across steps.
        return pl.BlockSpec(shape, lambda b, _n=len(shape): (0,) * _n)

    grid_spec = pltpu.PrefetchScalarGridSpec(
        num_scalar_prefetch=0,
        grid=(B,),
        in_specs=[
            pl.BlockSpec((1, S, D), lambda b: (b, 0, 0)),   # x: one batch per step
            resident((H, D, E)),                            # wq
            resident((H, D, E)),                            # wk
            resident((H, D, E)),                            # wv
            resident((H, E, D)),                            # wo
            resident((1, D)), resident((1, D)),             # g1, b1
            resident((D, F)), resident((1, F)),             # w1, c1
            resident((F, D)), resident((1, D)),             # w2, c2
            resident((1, D)), resident((1, D)),             # g2, b2
        ],
        out_specs=pl.BlockSpec((1, S, D), lambda b: (b, 0, 0)),
    )

    # TODO(synk): at production sizes, grid over row tiles of B*S (>=256 rows)
    # instead of single batches, and size KV / hmid tiles so double-buffered
    # inputs + fp32 scratch fit v7x's 64 MiB VMEM.
    return pl.pallas_call(
        kernel,
        out_shape=jax.ShapeDtypeStruct((B, S, D), x.dtype),
        grid_spec=grid_spec,
        compiler_params=pltpu.CompilerParams(
            dimension_semantics=("parallel",),
            vmem_limit_bytes=32 * 1024 * 1024,
        ),
    )(x, params["wq"], params["wk"], params["wv"], params["wo"],
      params["g1"], params["b1"], params["w1"], params["c1"],
      params["w2"], params["c2"], params["g2"], params["b2"])


# ----------------------------------------------------------------------------
# Pure-JAX reference (same math) for a correctness check
# ----------------------------------------------------------------------------
def encoder_reference(x, params, *, eps=1e-5):
    H, _, E = params["wq"].shape
    scale = 1.0 / math.sqrt(float(E))

    def ln(y, g, b):
        mu = jnp.mean(y, axis=-1, keepdims=True)
        var = jnp.mean((y - mu) ** 2, axis=-1, keepdims=True)
        return (y - mu) * jax.lax.rsqrt(var + eps) * g + b

    q = jnp.einsum("bsd,hde->bhse", x, params["wq"])
    k = jnp.einsum("bsd,hde->bhse", x, params["wk"])
    v = jnp.einsum("bsd,hde->bhse", x, params["wv"])
    s = jnp.einsum("bhqe,bhke->bhqk", q, k) * scale
    a = jax.nn.softmax(s, axis=-1)
    ctx = jnp.einsum("bhqk,bhke->bhqe", a, v)
    z = jnp.einsum("bhse,hed->bsd", ctx, params["wo"])

    r1 = ln(x + z, params["g1"], params["b1"])
    h = r1 @ params["w1"] + params["c1"]
    h = h * jax.nn.sigmoid(h)
    d2 = h @ params["w2"] + params["c2"]
    return ln(r1 + d2, params["g2"], params["b2"])


# ----------------------------------------------------------------------------
# Deterministic parameter init (t-fixup-style scaled Xavier; synthetic)
# ----------------------------------------------------------------------------
def init_params(key, *, D, E, H, F, layer_count):
    tfixup = (9.0 * layer_count) ** -0.25

    def xavier(k, shape, fan_in, fan_out, scale=1.0):
        std = math.sqrt(2.0 / (fan_in + fan_out)) * scale
        return jax.random.normal(k, shape, jnp.float32) * std

    ks = jax.random.split(key, 8)
    return {
        "wq": xavier(ks[0], (H, D, E), D, E, tfixup),
        "wk": xavier(ks[1], (H, D, E), D, E, tfixup),
        "wv": xavier(ks[2], (H, D, E), D, E, tfixup),
        "wo": xavier(ks[3], (H, E, D), H * E, D, tfixup),
        "g1": jnp.ones((1, D), jnp.float32),
        "b1": jnp.zeros((1, D), jnp.float32),
        "w1": xavier(ks[4], (D, F), D, F, tfixup),
        "c1": 0.01 * jax.random.normal(ks[5], (1, F), jnp.float32),
        "w2": xavier(ks[6], (F, D), F, D, tfixup),
        "c2": 0.01 * jax.random.normal(ks[7], (1, D), jnp.float32),
        "g2": jnp.ones((1, D), jnp.float32),
        "b2": jnp.zeros((1, D), jnp.float32),
    }


if __name__ == "__main__":
    # Small shapes consistent with the module:
    #   input_dim=32, attention_internal_dim=8, attention_head_num=4,
    #   ffnn_hidden_dim=64, layer_count=2, layer_norm=True, activation='swish'
    B, S, D, E, H, F = 2, 8, 32, 8, 4, 64

    key = jax.random.PRNGKey(0)
    kx, kp = jax.random.split(key)
    x = jax.random.normal(kx, (B, S, D), jnp.float32)
    params = init_params(kp, D=D, E=E, H=H, F=F, layer_count=2)

    out = jax.block_until_ready(encoder_forward(x, params))
    ref = jax.block_until_ready(encoder_reference(x, params))

    assert out.shape == (B, S, D) and out.dtype == jnp.float32
    # Exact fp32 math everywhere (softmax uses an exact divide after the PV
    # matmul), so tight tolerance vs. the pure-JAX reference.
    np.testing.assert_allclose(np.asarray(out), np.asarray(ref),
                               rtol=1e-4, atol=1e-4)
    print("KERNEL_OK")
</pallas_src>

<mosaic_0001>
module attributes {stable_mosaic.version = 11 : i64} {
  func.func @encoder_kernel(%arg0: i32, %arg1: memref<1x8x32xf32, #tpu.memory_space<vmem>>, %arg2: memref<4x32x8xf32, #tpu.memory_space<vmem>>, %arg3: memref<4x32x8xf32, #tpu.memory_space<vmem>>, %arg4: memref<4x32x8xf32, #tpu.memory_space<vmem>>, %arg5: memref<4x8x32xf32, #tpu.memory_space<vmem>>, %arg6: memref<1x32xf32, #tpu.memory_space<vmem>>, %arg7: memref<1x32xf32, #tpu.memory_space<vmem>>, %arg8: memref<32x64xf32, #tpu.memory_space<vmem>>, %arg9: memref<1x64xf32, #tpu.memory_space<vmem>>, %arg10: memref<64x32xf32, #tpu.memory_space<vmem>>, %arg11: memref<1x32xf32, #tpu.memory_space<vmem>>, %arg12: memref<1x32xf32, #tpu.memory_space<vmem>>, %arg13: memref<1x32xf32, #tpu.memory_space<vmem>>, %arg14: memref<1x8x32xf32, #tpu.memory_space<vmem>>) attributes {dimension_semantics = [#tpu.dimension_semantics<parallel>], iteration_bounds = array<i64: 2>, scalar_prefetch = 0 : i64, scratch_operands = 0 : i64, tpu.core_type = #tpu.core_type<tc>, window_params = [{transform_indices = @transform_0, window_bounds = array<i64: 1, 8, 32>}, {pipeline_mode = #tpu.pipeline_mode<synchronous>, transform_indices = @transform_1, window_bounds = array<i64: 4, 32, 8>}, {pipeline_mode = #tpu.pipeline_mode<synchronous>, transform_indices = @transform_2, window_bounds = array<i64: 4, 32, 8>}, {pipeline_mode = #tpu.pipeline_mode<synchronous>, transform_indices = @transform_3, window_bounds = array<i64: 4, 32, 8>}, {pipeline_mode = #tpu.pipeline_mode<synchronous>, transform_indices = @transform_4, window_bounds = array<i64: 4, 8, 32>}, {pipeline_mode = #tpu.pipeline_mode<synchronous>, transform_indices = @transform_5, window_bounds = array<i64: 1, 32>}, {pipeline_mode = #tpu.pipeline_mode<synchronous>, transform_indices = @transform_6, window_bounds = array<i64: 1, 32>}, {pipeline_mode = #tpu.pipeline_mode<synchronous>, transform_indices = @transform_7, window_bounds = array<i64: 32, 64>}, {pipeline_mode = #tpu.pipeline_mode<synchronous>, transform_indices = @transform_8, window_bounds = array<i64: 1, 64>}, {pipeline_mode = #tpu.pipeline_mode<synchronous>, transform_indices = @transform_9, window_bounds = array<i64: 64, 32>}, {pipeline_mode = #tpu.pipeline_mode<synchronous>, transform_indices = @transform_10, window_bounds = array<i64: 1, 32>}, {pipeline_mode = #tpu.pipeline_mode<synchronous>, transform_indices = @transform_11, window_bounds = array<i64: 1, 32>}, {pipeline_mode = #tpu.pipeline_mode<synchronous>, transform_indices = @transform_12, window_bounds = array<i64: 1, 32>}, {transform_indices = @transform_13, window_bounds = array<i64: 1, 8, 32>}]} {
    %c0 = arith.constant 0 : index
    %c0_0 = arith.constant 0 : index
    %c0_1 = arith.constant 0 : index
    %0 = vector.load %arg1[%c0, %c0_0, %c0_1] : memref<1x8x32xf32, #tpu.memory_space<vmem>>, vector<1x8x32xf32>
    %1 = vector.shape_cast %0 : vector<1x8x32xf32> to vector<8x32xf32>
    %2 = vector.shape_cast %1 : vector<8x32xf32> to vector<1x8x32xf32>
    %3 = vector.broadcast %2 : vector<1x8x32xf32> to vector<4x8x32xf32>
    %c0_2 = arith.constant 0 : index
    %c0_3 = arith.constant 0 : index
    %c0_4 = arith.constant 0 : index
    %4 = vector.load %arg2[%c0_2, %c0_3, %c0_4] : memref<4x32x8xf32, #tpu.memory_space<vmem>>, vector<4x32x8xf32>
    "tpu.trace_start"() <{level = 10 : i32, message = "hsd,hde->hse"}> : () -> ()
    %cst = arith.constant dense<0.000000e+00> : vector<4x8x8xf32>
    %5 = tpu.matmul %3, %4, %cst {dimension_numbers = #tpu.dot_dimension_numbers<[2], [1], [1], [2], [0, 0, 0, 1, 1, 2], [0], [0]>} : vector<4x8x32xf32>, vector<4x32x8xf32>, vector<4x8x8xf32> -> vector<4x8x8xf32>
    "tpu.trace_stop"() : () -> ()
    %c0_5 = arith.constant 0 : index
    %c0_6 = arith.constant 0 : index
    %c0_7 = arith.constant 0 : index
    %6 = vector.load %arg3[%c0_5, %c0_6, %c0_7] : memref<4x32x8xf32, #tpu.memory_space<vmem>>, vector<4x32x8xf32>
    "tpu.trace_start"() <{level = 10 : i32, message = "hsd,hde->hse"}> : () -> ()
    %cst_8 = arith.constant dense<0.000000e+00> : vector<4x8x8xf32>
    %7 = tpu.matmul %3, %6, %cst_8 {dimension_numbers = #tpu.dot_dimension_numbers<[2], [1], [1], [2], [0, 0, 0, 1, 1, 2], [0], [0]>} : vector<4x8x32xf32>, vector<4x32x8xf32>, vector<4x8x8xf32> -> vector<4x8x8xf32>
    "tpu.trace_stop"() : () -> ()
    %c0_9 = arith.constant 0 : index
    %c0_10 = arith.constant 0 : index
    %c0_11 = arith.constant 0 : index
    %8 = vector.load %arg4[%c0_9, %c0_10, %c0_11] : memref<4x32x8xf32, #tpu.memory_space<vmem>>, vector<4x32x8xf32>
    "tpu.trace_start"() <{level = 10 : i32, message = "hsd,hde->hse"}> : () -> ()
    %cst_12 = arith.constant dense<0.000000e+00> : vector<4x8x8xf32>
    %9 = tpu.matmul %3, %8, %cst_12 {dimension_numbers = #tpu.dot_dimension_numbers<[2], [1], [1], [2], [0, 0, 0, 1, 1, 2], [0], [0]>} : vector<4x8x32xf32>, vector<4x32x8xf32>, vector<4x8x8xf32> -> vector<4x8x8xf32>
    "tpu.trace_stop"() : () -> ()
    "tpu.trace_start"() <{level = 10 : i32, message = "hqe,hke->hqk"}> : () -> ()
    %cst_13 = arith.constant dense<0.000000e+00> : vector<4x8x8xf32>
    %10 = tpu.matmul %5, %7, %cst_13 {dimension_numbers = #tpu.dot_dimension_numbers<[2], [2], [1], [1], [0, 0, 0, 1, 1, 1], [0], [0]>} : vector<4x8x8xf32>, vector<4x8x8xf32>, vector<4x8x8xf32> -> vector<4x8x8xf32>
    "tpu.trace_stop"() : () -> ()
    %cst_14 = arith.constant 0.353553385 : f32
    %11 = vector.broadcast %cst_14 : f32 to vector<4x8x8xf32>
    %12 = arith.mulf %10, %11 : vector<4x8x8xf32>
    %cst_15 = arith.constant dense<0xFF800000> : vector<4x8xf32>
    %13 = vector.multi_reduction <maximumf>, %12, %cst_15 [2] : vector<4x8x8xf32> to vector<4x8xf32>
    %14 = vector.shape_cast %13 : vector<4x8xf32> to vector<4x8x1xf32>
    %15 = vector.broadcast %14 : vector<4x8x1xf32> to vector<4x8x8xf32>
    %16 = arith.subf %12, %15 : vector<4x8x8xf32>
    %17 = math.exp %16 : vector<4x8x8xf32>
    %cst_16 = arith.constant dense<0.000000e+00> : vector<4x8xf32>
    %18 = vector.multi_reduction <add>, %17, %cst_16 [2] : vector<4x8x8xf32> to vector<4x8xf32>
    %19 = vector.shape_cast %18 : vector<4x8xf32> to vector<4x8x1xf32>
    "tpu.trace_start"() <{level = 10 : i32, message = "hqk,hke->hqe"}> : () -> ()
    %cst_17 = arith.constant dense<0.000000e+00> : vector<4x8x8xf32>
    %20 = tpu.matmul %17, %9, %cst_17 {dimension_numbers = #tpu.dot_dimension_numbers<[2], [1], [1], [2], [0, 0, 0, 1, 1, 2], [0], [0]>} : vector<4x8x8xf32>, vector<4x8x8xf32>, vector<4x8x8xf32> -> vector<4x8x8xf32>
    "tpu.trace_stop"() : () -> ()
    %21 = vector.broadcast %19 : vector<4x8x1xf32> to vector<4x8x8xf32>
    %22 = arith.divf %20, %21 : vector<4x8x8xf32>
    %c0_18 = arith.constant 0 : index
    %c0_19 = arith.constant 0 : index
    %c0_20 = arith.constant 0 : index
    %23 = vector.load %arg5[%c0_18, %c0_19, %c0_20] : memref<4x8x32xf32, #tpu.memory_space<vmem>>, vector<4x8x32xf32>
    "tpu.trace_start"() <{level = 10 : i32, message = "hqe,hed->hqd"}> : () -> ()
    %cst_21 = arith.constant dense<0.000000e+00> : vector<4x8x32xf32>
    %24 = tpu.matmul %22, %23, %cst_21 {dimension_numbers = #tpu.dot_dimension_numbers<[2], [1], [1], [2], [0, 0, 0, 1, 1, 2], [0], [0]>} : vector<4x8x8xf32>, vector<4x8x32xf32>, vector<4x8x32xf32> -> vector<4x8x32xf32>
    "tpu.trace_stop"() : () -> ()
    %cst_22 = arith.constant dense<0.000000e+00> : vector<8x32xf32>
    %25 = vector.multi_reduction <add>, %24, %cst_22 [0] : vector<4x8x32xf32> to vector<8x32xf32>
    %26 = arith.addf %1, %25 : vector<8x32xf32>
    %c0_23 = arith.constant 0 : index
    %c0_24 = arith.constant 0 : index
    %27 = vector.load %arg6[%c0_23, %c0_24] : memref<1x32xf32, #tpu.memory_space<vmem>>, vector<1x32xf32>
    %c0_25 = arith.constant 0 : index
    %c0_26 = arith.constant 0 : index
    %28 = vector.load %arg7[%c0_25, %c0_26] : memref<1x32xf32, #tpu.memory_space<vmem>>, vector<1x32xf32>
    %cst_27 = arith.constant dense<0.000000e+00> : vector<8xf32>
    %29 = vector.multi_reduction <add>, %26, %cst_27 [1] : vector<8x32xf32> to vector<8xf32>
    %30 = vector.shape_cast %29 : vector<8xf32> to vector<8x1xf32>
    %cst_28 = arith.constant 3.200000e+01 : f32
    %31 = vector.broadcast %cst_28 : f32 to vector<8x1xf32>
    %32 = arith.divf %30, %31 : vector<8x1xf32>
    %33 = vector.broadcast %32 : vector<8x1xf32> to vector<8x32xf32>
    %34 = arith.subf %26, %33 : vector<8x32xf32>
    %35 = arith.mulf %34, %34 : vector<8x32xf32>
    %cst_29 = arith.constant dense<0.000000e+00> : vector<8xf32>
    %36 = vector.multi_reduction <add>, %35, %cst_29 [1] : vector<8x32xf32> to vector<8xf32>
    %37 = vector.shape_cast %36 : vector<8xf32> to vector<8x1xf32>
    %cst_30 = arith.constant 3.200000e+01 : f32
    %38 = vector.broadcast %cst_30 : f32 to vector<8x1xf32>
    %39 = arith.divf %37, %38 : vector<8x1xf32>
    %40 = vector.broadcast %32 : vector<8x1xf32> to vector<8x32xf32>
    %41 = arith.subf %26, %40 : vector<8x32xf32>
    %cst_31 = arith.constant 9.99999974E-6 : f32
    %42 = vector.broadcast %cst_31 : f32 to vector<8x1xf32>
    %43 = arith.addf %39, %42 : vector<8x1xf32>
    %44 = math.rsqrt %43 : vector<8x1xf32>
    %45 = vector.broadcast %44 : vector<8x1xf32> to vector<8x32xf32>
    %46 = arith.mulf %41, %45 : vector<8x32xf32>
    %47 = vector.broadcast %27 : vector<1x32xf32> to vector<8x32xf32>
    %48 = arith.mulf %46, %47 : vector<8x32xf32>
    %49 = vector.broadcast %28 : vector<1x32xf32> to vector<8x32xf32>
    %50 = arith.addf %48, %49 : vector<8x32xf32>
    %c0_32 = arith.constant 0 : index
    %c0_33 = arith.constant 0 : index
    %51 = vector.load %arg8[%c0_32, %c0_33] : memref<32x64xf32, #tpu.memory_space<vmem>>, vector<32x64xf32>
    %cst_34 = arith.constant dense<0.000000e+00> : vector<8x64xf32>
    %52 = tpu.matmul %50, %51, %cst_34 {dimension_numbers = #tpu.dot_dimension_numbers<[1], [0], [0], [1], [0, 0, 1, 1], [], []>} : vector<8x32xf32>, vector<32x64xf32>, vector<8x64xf32> -> vector<8x64xf32>
    %c0_35 = arith.constant 0 : index
    %c0_36 = arith.constant 0 : index
    %53 = vector.load %arg9[%c0_35, %c0_36] : memref<1x64xf32, #tpu.memory_space<vmem>>, vector<1x64xf32>
    %54 = vector.broadcast %53 : vector<1x64xf32> to vector<8x64xf32>
    %55 = arith.addf %52, %54 : vector<8x64xf32>
    %56 = arith.negf %55 : vector<8x64xf32>
    %57 = math.exp %56 : vector<8x64xf32>
    %cst_37 = arith.constant 1.000000e+00 : f32
    %58 = vector.broadcast %cst_37 : f32 to vector<8x64xf32>
    %59 = arith.addf %58, %57 : vector<8x64xf32>
    %60 = arith.divf %58, %59 : vector<8x64xf32>
    %61 = arith.mulf %55, %60 : vector<8x64xf32>
    %c0_38 = arith.constant 0 : index
    %c0_39 = arith.constant 0 : index
    %62 = vector.load %arg10[%c0_38, %c0_39] : memref<64x32xf32, #tpu.memory_space<vmem>>, vector<64x32xf32>
    %cst_40 = arith.constant dense<0.000000e+00> : vector<8x32xf32>
    %63 = tpu.matmul %61, %62, %cst_40 {dimension_numbers = #tpu.dot_dimension_numbers<[1], [0], [0], [1], [0, 0, 1, 1], [], []>} : vector<8x64xf32>, vector<64x32xf32>, vector<8x32xf32> -> vector<8x32xf32>
    %c0_41 = arith.constant 0 : index
    %c0_42 = arith.constant 0 : index
    %64 = vector.load %arg11[%c0_41, %c0_42] : memref<1x32xf32, #tpu.memory_space<vmem>>, vector<1x32xf32>
    %65 = vector.broadcast %64 : vector<1x32xf32> to vector<8x32xf32>
    %66 = arith.addf %63, %65 : vector<8x32xf32>
    %67 = arith.addf %50, %66 : vector<8x32xf32>
    %c0_43 = arith.constant 0 : index
    %c0_44 = arith.constant 0 : index
    %68 = vector.load %arg12[%c0_43, %c0_44] : memref<1x32xf32, #tpu.memory_space<vmem>>, vector<1x32xf32>
    %c0_45 = arith.constant 0 : index
    %c0_46 = arith.constant 0 : index
    %69 = vector.load %arg13[%c0_45, %c0_46] : memref<1x32xf32, #tpu.memory_space<vmem>>, vector<1x32xf32>
    %cst_47 = arith.constant dense<0.000000e+00> : vector<8xf32>
    %70 = vector.multi_reduction <add>, %67, %cst_47 [1] : vector<8x32xf32> to vector<8xf32>
    %71 = vector.shape_cast %70 : vector<8xf32> to vector<8x1xf32>
    %cst_48 = arith.constant 3.200000e+01 : f32
    %72 = vector.broadcast %cst_48 : f32 to vector<8x1xf32>
    %73 = arith.divf %71, %72 : vector<8x1xf32>
    %74 = vector.broadcast %73 : vector<8x1xf32> to vector<8x32xf32>
    %75 = arith.subf %67, %74 : vector<8x32xf32>
    %76 = arith.mulf %75, %75 : vector<8x32xf32>
    %cst_49 = arith.constant dense<0.000000e+00> : vector<8xf32>
    %77 = vector.multi_reduction <add>, %76, %cst_49 [1] : vector<8x32xf32> to vector<8xf32>
    %78 = vector.shape_cast %77 : vector<8xf32> to vector<8x1xf32>
    %cst_50 = arith.constant 3.200000e+01 : f32
    %79 = vector.broadcast %cst_50 : f32 to vector<8x1xf32>
    %80 = arith.divf %78, %79 : vector<8x1xf32>
    %81 = vector.broadcast %73 : vector<8x1xf32> to vector<8x32xf32>
    %82 = arith.subf %67, %81 : vector<8x32xf32>
    %cst_51 = arith.constant 9.99999974E-6 : f32
    %83 = vector.broadcast %cst_51 : f32 to vector<8x1xf32>
    %84 = arith.addf %80, %83 : vector<8x1xf32>
    %85 = math.rsqrt %84 : vector<8x1xf32>
    %86 = vector.broadcast %85 : vector<8x1xf32> to vector<8x32xf32>
    %87 = arith.mulf %82, %86 : vector<8x32xf32>
    %88 = vector.broadcast %68 : vector<1x32xf32> to vector<8x32xf32>
    %89 = arith.mulf %87, %88 : vector<8x32xf32>
    %90 = vector.broadcast %69 : vector<1x32xf32> to vector<8x32xf32>
    %91 = arith.addf %89, %90 : vector<8x32xf32>
    %c0_52 = arith.constant 0 : index
    %c0_53 = arith.constant 0 : index
    %c0_54 = arith.constant 0 : index
    %92 = vector.load %arg14[%c0_52, %c0_53, %c0_54] : memref<1x8x32xf32, #tpu.memory_space<vmem>>, vector<1x8x32xf32>
    %93 = vector.shape_cast %92 : vector<1x8x32xf32> to vector<8x32xf32>
    %94 = vector.shape_cast %91 : vector<8x32xf32> to vector<1x8x32xf32>
    tpu.vector_store %arg14[%c0_52, %c0_53, %c0_54], %94 {strides = array<i32>} : memref<1x8x32xf32, #tpu.memory_space<vmem>>, vector<1x8x32xf32>,
    return
  }
  func.func @transform_0(%arg0: i32) -> (i32, i32, i32) {
    %c0_i32 = arith.constant 0 : i32
    %c0_i32_0 = arith.constant 0 : i32
    %c0_i32_1 = arith.constant 0 : i32
    return %arg0, %c0_i32, %c0_i32_0 : i32, i32, i32
  }
  func.func @transform_1(%arg0: i32) -> (i32, i32, i32) {
    %c0_i32 = arith.constant 0 : i32
    %c0_i32_0 = arith.constant 0 : i32
    %c0_i32_1 = arith.constant 0 : i32
    %c0_i32_2 = arith.constant 0 : i32
    return %c0_i32, %c0_i32_0, %c0_i32_1 : i32, i32, i32
  }
  func.func @transform_2(%arg0: i32) -> (i32, i32, i32) {
    %c0_i32 = arith.constant 0 : i32
    %c0_i32_0 = arith.constant 0 : i32
    %c0_i32_1 = arith.constant 0 : i32
    %c0_i32_2 = arith.constant 0 : i32
    return %c0_i32, %c0_i32_0, %c0_i32_1 : i32, i32, i32
  }
  func.func @transform_3(%arg0: i32) -> (i32, i32, i32) {
    %c0_i32 = arith.constant 0 : i32
    %c0_i32_0 = arith.constant 0 : i32
    %c0_i32_1 = arith.constant 0 : i32
    %c0_i32_2 = arith.constant 0 : i32
    return %c0_i32, %c0_i32_0, %c0_i32_1 : i32, i32, i32
  }
  func.func @transform_4(%arg0: i32) -> (i32, i32, i32) {
    %c0_i32 = arith.constant 0 : i32
    %c0_i32_0 = arith.constant 0 : i32
    %c0_i32_1 = arith.constant 0 : i32
    %c0_i32_2 = arith.constant 0 : i32
    return %c0_i32, %c0_i32_0, %c0_i32_1 : i32, i32, i32
  }
  func.func @transform_5(%arg0: i32) -> (i32, i32) {
    %c0_i32 = arith.constant 0 : i32
    %c0_i32_0 = arith.constant 0 : i32
    %c0_i32_1 = arith.constant 0 : i32
    return %c0_i32, %c0_i32_0 : i32, i32
  }
  func.func @transform_6(%arg0: i32) -> (i32, i32) {
    %c0_i32 = arith.constant 0 : i32
    %c0_i32_0 = arith.constant 0 : i32
    %c0_i32_1 = arith.constant 0 : i32
    return %c0_i32, %c0_i32_0 : i32, i32
  }
  func.func @transform_7(%arg0: i32) -> (i32, i32) {
    %c0_i32 = arith.constant 0 : i32
    %c0_i32_0 = arith.constant 0 : i32
    %c0_i32_1 = arith.constant 0 : i32
    return %c0_i32, %c0_i32_0 : i32, i32
  }
  func.func @transform_8(%arg0: i32) -> (i32, i32) {
    %c0_i32 = arith.constant 0 : i32
    %c0_i32_0 = arith.constant 0 : i32
    %c0_i32_1 = arith.constant 0 : i32
    return %c0_i32, %c0_i32_0 : i32, i32
  }
  func.func @transform_9(%arg0: i32) -> (i32, i32) {
    %c0_i32 = arith.constant 0 : i32
    %c0_i32_0 = arith.constant 0 : i32
    %c0_i32_1 = arith.constant 0 : i32
    return %c0_i32, %c0_i32_0 : i32, i32
  }
  func.func @transform_10(%arg0: i32) -> (i32, i32) {
    %c0_i32 = arith.constant 0 : i32
    %c0_i32_0 = arith.constant 0 : i32
    %c0_i32_1 = arith.constant 0 : i32
    return %c0_i32, %c0_i32_0 : i32, i32
  }
  func.func @transform_11(%arg0: i32) -> (i32, i32) {
    %c0_i32 = arith.constant 0 : i32
    %c0_i32_0 = arith.constant 0 : i32
    %c0_i32_1 = arith.constant 0 : i32
    return %c0_i32, %c0_i32_0 : i32, i32
  }
  func.func @transform_12(%arg0: i32) -> (i32, i32) {
    %c0_i32 = arith.constant 0 : i32
    %c0_i32_0 = arith.constant 0 : i32
    %c0_i32_1 = arith.constant 0 : i32
    return %c0_i32, %c0_i32_0 : i32, i32
  }
  func.func @transform_13(%arg0: i32) -> (i32, i32, i32) {
    %c0_i32 = arith.constant 0 : i32
    %c0_i32_0 = arith.constant 0 : i32
    %c0_i32_1 = arith.constant 0 : i32
    return %arg0, %c0_i32, %c0_i32_0 : i32, i32, i32
  }
}

</mosaic_0001>

<bundles_post_ra>
// kernel: tpu_custom_call.1
= control target key start
LH: loop header
LB: loop body
LE: loop exit
PB: predicated region body
PF: predicated region fallthrough
CT: control target
= control target key end

     0   :  { %s1975_s0 = inlined_call_operand.vmem [shape: f32[2,8,32], index: 0, kind: input, shape index: {}]   ;;  %s1976_s1 = inlined_call_operand.vmem [shape: f32[4,32,8], index: 1, kind: input, shape index: {}]   ;;  %s1977_s2 = inlined_call_operand.vmem [shape: f32[4,32,8], index: 2, kind: input, shape index: {}]   ;;  %s1978_s3 = inlined_call_operand.vmem [shape: f32[4,32,8], index: 3, kind: input, shape index: {}]   ;;  %s1979_s4 = inlined_call_operand.vmem [shape: f32[4,8,32], index: 4, kind: input, shape index: {}]   ;;  %s1980_s5 = inlined_call_operand.vmem [shape: f32[1,32], index: 5, kind: input, shape index: {}]   ;;  %s1981_s6 = inlined_call_operand.vmem [shape: f32[1,32], index: 6, kind: input, shape index: {}]   ;;  %s1982_s7 = inlined_call_operand.vmem [shape: f32[32,64], index: 7, kind: input, shape index: {}]   ;;  %s1983_s8 = inlined_call_operand.vmem [shape: f32[1,64], index: 8, kind: input, shape index: {}]   ;;  %s1984_s9 = inlined_call_operand.vmem [shape: f32[64,32], index: 9, kind: input, shape index: {}]   ;;  %s1985_s10 = inlined_call_operand.vmem [shape: f32[1,32], index: 10, kind: input, shape index: {}]   ;;  %s1986_s11 = inlined_call_operand.vmem [shape: f32[1,32], index: 11, kind: input, shape index: {}]   ;;  %s1987_s12 = inlined_call_operand.vmem [shape: f32[1,32], index: 12, kind: input, shape index: {}]   ;;  %s1988_s13 = inlined_call_operand.hbm [shape: f32[2,8,32], index: 13, kind: output, shape index: {}]  }
   0x1   :  { %1992 = sst [smem:[#allocation8_spill]] %s1975_s0 }
   0x2   :  { %18 = vsyncpa [#allocation3], 0 }
   0x3   :  { %20 = vsyncpa [#allocation3 + $0x1], 0  ;;  %s1613_s25 = smov 0   ;;  %s1615_s26 = smov 0  }
   0x4   :  { %s1617_s27 = smov 0   ;;  %s1619_s28 = smov 0  }
   0x5 LB: > { %1993 = sst [smem:[#allocation5_spill]] %s1536_s27  ;;  %s1634_s29 = sadd.s32 4294967295, %s1540_s28   ;;  %s1540_s28 = sphi %s1619_s28, %s1999_s28   ;;  %s1536_s27 = sphi %s1617_s27, %s2001_s27   ;;  %s1532_s26 = sphi %s1615_s26, %s2003_s26   ;;  %s1528_s25 = sphi %s1613_s25, %s2002_s25  }
   0x6   : > { %s1365_s30 = sadd.s32 4294967294, %s1540_s28   ;;  %s1638_s14 = sadd.s32 1, %s1540_s28  }
   0x7   : > { %1994 = sst [smem:[#allocation6_spill]] %s1638_s14  ;;  %s311_s15 = sadd.s32 1, %s1536_s27 }
   0x8   : > { %s308_s16 = ssub.s32 %s1540_s28, %s1638_s14  ;;  %p321_p0 = scmp.ne.s32.totalorder %s1536_s27, %s1532_s26 }
   0x9   : > { %p309_p1 = scmp.eq.s32.totalorder %s308_s16, 0  ;;  %p322_p2 = scmp.eq.s32.totalorder %s1634_s29, 1 }
   0xa   : > { %p327_p3 = scmp.ne.s32.totalorder %s1532_s26, %s1528_s25  ;;  %p328_p4 = scmp.eq.s32.totalorder %s1365_s30, 1 }
   0xb   : > { %s1649_s17 = scalar_select %p309_p1, %s1536_s27, %s311_s15  }
   0xc   : > { %p1651_p5 = por %p322_p2, %p321_p0  ;;  %p1655_p6 = por %p328_p4, %p327_p3 }
   0xd   : > { %1995 = sst [smem:[#allocation7_spill]] %s1649_s17  ;;  %p1368_p7 = scmp.ge.s32.totalorder %s1540_s28, 1 }
   0xe   : > { %p389_p8 = scmp.lt.s32.totalorder %s1540_s28, 3 }
  0x10   : > { %p390_p9 = pnand %p1368_p7, %p389_p8 }
  0x11   : > { %p432_p10 = scmp.lt.s32.totalorder (!%p390_p9), %s1634_s29, 1  ;;  %s1998_s0 = sld [smem:[#allocation8_spill]] (!%p390_p9) }
  0x12   : > { %393 = sbr.rel (%p390_p9) target bundleno = 1553 (0x611), region = 72  ;;  %s429_s27 = sand.u32 (!%p390_p9), 1, %s1532_s26  }
  0x13   : > { %s1369_s21 = sshll.u32 (!%p390_p9), %s429_s27, 3  ;;  %s1291_s22 = scalar_lea.sflag (!%p390_p9), [#allocation3], %s429_s27 }
  0x17   : > { %v440_v0 = vld [vmem:[%s1976_s1 + $0x18] sm:$0xff]  ;;  %v439_v2 = vld [vmem:[%s1976_s1 + $0x10] sm:$0xff]  ;;  %v438_v5 = vld [vmem:[%s1976_s1 + $0x8] sm:$0xff]  ;;  %s433_s16 = scalar_select %p432_p10, %s1634_s29, 1  ;;  %vm453_vm0 = vcmask 261120   ;;  %vm729_vm1 = vcmask 64512  }
  0x18   : > { %v444_v1 = vld [vmem:[%s1976_s1 + $0x38] sm:$0xff]  ;;  %469 = vmatpush.msra.mxu0 %v440_v0  ;;  %v443_v3 = vld [vmem:[%s1976_s1 + $0x30] sm:$0xff]  ;;  %v442_v6 = vld [vmem:[%s1976_s1 + $0x28] sm:$0xff] }
  0x19   : > { %489 = vmatpush.msra.mxu2 %v444_v1  ;;  %v544_v4 = vld [vmem:[%s1977_s2 + $0x38] sm:$0xff]  ;;  %v543_v8 = vld [vmem:[%s1977_s2 + $0x30] sm:$0xff]  ;;  %v437_v10 = vld [vmem:[%s1976_s1] sm:$0xff]  ;;  %s1370_s24 = sshll.u32 %s433_s16, 3  ;;  %s1403_s16 = sshll.u32 %s1634_s29, 3 }
  0x1a   : > { %585 = vmatpush.msra.mxu1 %v544_v4  ;;  %v452_v7 = vld [vmem:[%s1976_s1 + $0x78] sm:$0xff]  ;;  %470 = vmatpush.msra.mxu0 %v439_v2  ;;  %v451_v9 = vld [vmem:[%s1976_s1 + $0x70] sm:$0xff]  ;;  %v441_v11 = vld [vmem:[%s1976_s1 + $0x20] sm:$0xff]  ;;  %s435_s20 = scalar_lea.vmem %s1998_s0, %s1370_s24  ;;  %s1301_s30 = scalar_lea.hbm %s1988_s13, %s1403_s16 }
  0x1b   : > { %490 = vmatpush.msra.mxu2 %v443_v3  ;;  %529 = vmatpush.msra.mxu3 %v452_v7  ;;  %v542_v12 = vld [vmem:[%s1977_s2 + $0x28] sm:$0xff]  ;;  %v1705_v13 = vld [vmem:[%s435_s20] sm:$0xff]  ;;  %v448_v14 = vld [vmem:[%s1976_s1 + $0x58] sm:$0xff]  ;;  %s431_s20 = scalar_lea.vmem [#allocation2], %s1369_s21  ;;  %s1305_s0 = sshll.u32 %s1301_s30, 4  ;;  %s1306_s0 = int_to_ptr.hbm [resolvable:$true] %s1305_s0 }
  0x1c   : > { %586 = vmatpush.msra.mxu1 %v543_v8  ;;  %471 = vmatpush.msra.mxu0 %v438_v5  ;;  %v540_v15 = vld [vmem:[%s1977_s2 + $0x18] sm:$0xff]  ;;  %v450_v16 = vld [vmem:[%s1976_s1 + $0x68] sm:$0xff]  ;;  %v541_v17 = vld [vmem:[%s1977_s2 + $0x20] sm:$0xff]  ;;  %s1303_s29 = sshll.u32 %s431_s20, 4  ;;  %s1492_s23 = sshra.s32 %s1306_s0, 4  ;;  %s1304_s29 = int_to_ptr.vmem [resolvable:$true] %s1303_s29  ;;  %s1493_s23 = int_to_ptr.hbm [resolvable:$true] %s1492_s23 }
  0x1d   : > { %491 = vmatpush.msra.mxu2 %v442_v6  ;;  %530 = vmatpush.msra.mxu3 %v451_v9  ;;  %v447_v18 = vld [vmem:[%s1976_s1 + $0x50] sm:$0xff]  ;;  %v449_v20 = vld [vmem:[%s1976_s1 + $0x60] sm:$0xff]  ;;  %v446_v21 = vld [vmem:[%s1976_s1 + $0x48] sm:$0xff]  ;;  %s1494_s16 = scalar_lea.hbm %s1493_s23, 8  ;;  %s1498_s21 = scalar_lea.hbm %s1988_s13, 16 }
  0x1e   : > { %587 = vmatpush.msra.mxu1 %v542_v12  ;;  %472 = vmatpush.msra.mxu0 %v437_v10  ;;  %v539_v19 = vld [vmem:[%s1977_s2 + $0x10] sm:$0xff]  ;;  %v538_v22 = vld [vmem:[%s1977_s2 + $0x8] sm:$0xff]  ;;  %v552_v23 = vld [vmem:[%s1977_s2 + $0x78] sm:$0xff]  ;;  %p1495_p11 = scmp.ne.s32.totalorder %s1493_s23, %s1494_s16  ;;  %p1499_p0 = scmp.lt.s32.totalorder %s1493_s23, %s1988_s13 }
  0x1f   : > { %492 = vmatpush.msra.mxu2 %v441_v11  ;;  %1371 = vmatmul.msk.f32.vlgmr.msra.gmra.mxu0 %vm453_vm0, %v1705_v13  ;;  %v445_v24 = vld [vmem:[%s1976_s1 + $0x40] sm:$0xff]  ;;  %v551_v26 = vld [vmem:[%s1977_s2 + $0x70] sm:$0xff]  ;;  %v640_v27 = vld [vmem:[%s1978_s3 + $0x38] sm:$0xff]  ;;  %p1500_p1 = scmp.lt.s32.totalorder %s1498_s21, %s1494_s16 }
  0x20   : > { %1372 = vmatmul.msk.f32.vlgmr.msra.gmra.mxu2 %vm453_vm0, %v1705_v13  ;;  %565 = vmatpush.msrb.mxu0 %v540_v15  ;;  %v537_v25 = vld [vmem:[%s1977_s2] sm:$0xff]  ;;  %v548_v28 = vld [vmem:[%s1977_s2 + $0x58] sm:$0xff]  ;;  %v639_v29 = vld [vmem:[%s1978_s3 + $0x30] sm:$0xff]  ;;  %p1496_p12 = pnand %p1495_p11, %p1651_p5 }
  0x21   : > { %509 = vmatpush.msrb.mxu2 %v448_v14  ;;  %531 = vmatpush.msra.mxu3 %v450_v16  ;;  %v550_v30 = vld [vmem:[%s1977_s2 + $0x68] sm:$0xff]  ;;  %v636_v31 = vld [vmem:[%s1978_s3 + $0x18] sm:$0xff]  ;;  %v547_v32 = vld [vmem:[%s1977_s2 + $0x50] sm:$0xff]  ;;  %p1501_p2 = por %p1500_p1, %p1499_p0 }
  0x22   : > { %588 = vmatpush.msra.mxu1 %v541_v17  ;;  %566 = vmatpush.msrb.mxu0 %v539_v19  ;;  %v638_v33 = vld [vmem:[%s1978_s3 + $0x28] sm:$0xff]  ;;  %v549_v34 = vld [vmem:[%s1977_s2 + $0x60] sm:$0xff]  ;;  %v635_v35 = vld [vmem:[%s1978_s3 + $0x10] sm:$0xff]  ;;  %p1497_p13 = pneg %p1496_p12 }
  0x23   : > { %510 = vmatpush.msrb.mxu2 %v447_v18  ;;  %1376 = vmatmul.msk.f32.vlgmr.msra.gmra.mxu1 %vm453_vm0, %v1705_v13  ;;  %v546_v36 = vld [vmem:[%s1977_s2 + $0x48] sm:$0xff]  ;;  %v637_v37 = vld [vmem:[%s1978_s3 + $0x20] sm:$0xff]  ;;  %v648_v41 = vld [vmem:[%s1978_s3 + $0x78] sm:$0xff] }
  0x24   : > { %532 = vmatpush.msra.mxu3 %v449_v20  ;;  %567 = vmatpush.msrb.mxu0 %v538_v22  ;;  %v545_v38 = vld [vmem:[%s1977_s2 + $0x40] sm:$0xff]  ;;  %v634_v39 = vld [vmem:[%s1978_s3 + $0x8] sm:$0xff]  ;;  %v647_v42 = vld [vmem:[%s1978_s3 + $0x70] sm:$0xff]  ;;  %p1502_p3 = pnand %p1501_p2, %p1497_p13 }
  0x25   : > { %511 = vmatpush.msrb.mxu2 %v446_v21  ;;  %1374 = vmatmul.msk.f32.vlgmr.msra.gmra.mxu3 %vm453_vm0, %v1705_v13  ;;  %v633_v40 = vld [vmem:[%s1978_s3] sm:$0xff]  ;;  %v644_v43 = vld [vmem:[%s1978_s3 + $0x58] sm:$0xff]  ;;  %v646_v44 = vld [vmem:[%s1978_s3 + $0x68] sm:$0xff] }
  0x26   : > { %625 = vmatpush.msrb.mxu3 %v552_v23  ;;  %681 = vmatpush.msrb.mxu1 %v640_v27  ;;  %v643_v45 = vld [vmem:[%s1978_s3 + $0x50] sm:$0xff]  ;;  %v645_v46 = vld [vmem:[%s1978_s3 + $0x60] sm:$0xff]  ;;  %v642_v47 = vld [vmem:[%s1978_s3 + $0x48] sm:$0xff] }
  0x27   : > { %512 = vmatpush.msrb.mxu2 %v445_v24  ;;  %568 = vmatpush.msrb.mxu0 %v537_v25  ;;  %v641_v48 = vld [vmem:[%s1978_s3 + $0x40] sm:$0xff] }
  0x28   : > { %1373 = vmatmul.msk.f32.vlgmr.msrb.gmra.mxu2 %vm453_vm0, %v1705_v13  ;;  %1375 = vmatmul.msk.f32.vlgmr.msrb.gmra.mxu0 %vm453_vm0, %v1705_v13 }
  0x29   : > { %626 = vmatpush.msrb.mxu3 %v551_v26  ;;  %605 = vmatpush.msra.mxu2 %v548_v28 }
  0x2a   : > { %682 = vmatpush.msrb.mxu1 %v639_v29  ;;  %661 = vmatpush.msra.mxu0 %v636_v31  ;;  %v1027_v31 = vld [vmem:[%s1979_s4 + $0x8] sm:$0xff] }
  0x2b   : > { %627 = vmatpush.msrb.mxu3 %v550_v30  ;;  %606 = vmatpush.msra.mxu2 %v547_v32  ;;  %v1026_v30 = vld [vmem:[%s1979_s4] sm:$0xff] }
  0x2c   : > { %683 = vmatpush.msrb.mxu1 %v638_v33  ;;  %662 = vmatpush.msra.mxu0 %v635_v35  ;;  %v1028_v33 = vld [vmem:[%s1979_s4 + $0x10] sm:$0xff] }
  0x2d   : > { %628 = vmatpush.msrb.mxu3 %v549_v34  ;;  %607 = vmatpush.msra.mxu2 %v546_v36 }
  0x2e   : > { %1378 = vmatmul.msk.f32.vlgmr.msrb.gmra.mxu3 %vm453_vm0, %v1705_v13  ;;  %684 = vmatpush.msrb.mxu1 %v637_v37 }
  0x2f   : > { %608 = vmatpush.msra.mxu2 %v545_v38  ;;  %1380 = vmatmul.msk.f32.vlgmr.msrb.gmra.mxu1 %vm453_vm0, %v1705_v13 }
  0x30   : > { %1377 = vmatmul.msk.f32.vlgmr.msra.gmra.mxu2 %vm453_vm0, %v1705_v13  ;;  %663 = vmatpush.msra.mxu0 %v634_v39 }
  0x31   : > { %721 = vmatpush.msra.mxu3 %v648_v41  ;;  %701 = vmatpush.msrb.mxu2 %v644_v43 }
  0x32   : > { %664 = vmatpush.msra.mxu0 %v633_v40 }
  0x33   : > { %1379 = vmatmul.msk.f32.vlgmr.msra.gmra.mxu0 %vm453_vm0, %v1705_v13  ;;  %722 = vmatpush.msra.mxu3 %v647_v42  ;;  %v1029_v42 = vld [vmem:[%s1979_s4 + $0x18] sm:$0xff] }
  0x34   : > { %702 = vmatpush.msrb.mxu2 %v643_v45 }
  0x35   : > { %723 = vmatpush.msra.mxu3 %v646_v44 }
  0x36   : > { %703 = vmatpush.msrb.mxu2 %v642_v47 }
  0x37   : > { %724 = vmatpush.msra.mxu3 %v645_v46 }
  0x38   : > { %1382 = vmatmul.msk.f32.vlgmr.msra.gmra.mxu3 %vm453_vm0, %v1705_v13  ;;  %704 = vmatpush.msrb.mxu2 %v641_v48 }
  0x39   : > { %1381 = vmatmul.msk.f32.vlgmr.msrb.gmra.mxu2 %vm453_vm0, %v1705_v13 }
  0x9c   : > { %v474_v49 = vpop.f32.mrf.mxu0 }
  0xa0   : > { %v590_v50 = vpop.f32.mrf.mxu1 }
  0xa1   : > { %1385 = vmatpush.xpose.msk.msra.mxu1 %vm729_vm1, %v590_v50 }
  0xa3   : > { %v494_v51 = vpop.f32.mrf.mxu2 }
  0xa4   : > { %1386 = vmatmul.msk.f32.vlgmr.msra.gmra.mxu1 %vm729_vm1, %v494_v51 }
  0xa5   : > { %v570_v52 = vpop.f32.mrf.mxu0 }
  0xa6   : > { %1383 = vmatpush.xpose.msk.msrb.mxu0 %vm729_vm1, %v570_v52 }
  0xa8   : > { %v534_v53 = vpop.f32.mrf.mxu3 }
  0xa9   : > { %1384 = vmatmul.msk.f32.vlgmr.msrb.gmra.mxu0 %vm729_vm1, %v474_v49 }
  0xab   : > { %v514_v54 = vpop.f32.mrf.mxu2 }
  0xac   : > { %v686_v55 = vpop.f32.mrf.mxu1 }
  0xad   : > { %915 = vmatpush.msrb.mxu1 %v686_v55 }
  0xaf   : > { %1071 = vmatpush.msra.mxu1 %v1027_v31 }
  0xb0   : > { %v666_v58 = vpop.f32.mrf.mxu0 }
  0xb1   : > { %v630_v56 = vpop.f32.mrf.mxu3  ;;  %892 = vmatpush.msra.mxu0 %v666_v58 }
  0xb2   : > { %1389 = vmatpush.xpose.msk.msrb.mxu3 %vm729_vm1, %v630_v56 }
  0xb3   : > { %v610_v57 = vpop.f32.mrf.mxu2  ;;  %1048 = vmatpush.msrb.mxu0 %v1026_v30 }
  0xb4   : > { %1387 = vmatpush.xpose.msk.msra.mxu2 %vm729_vm1, %v610_v57 }
  0xb5   : > { %1390 = vmatmul.msk.f32.vlgmr.msrb.gmra.mxu3 %vm729_vm1, %v534_v53 }
  0xb7   : > { %1388 = vmatmul.msk.f32.vlgmr.msra.gmra.mxu2 %vm729_vm1, %v514_v54 }
  0xbb   : > { %v726_v59 = vpop.f32.mrf.mxu3 }
  0xbc   : > { %961 = vmatpush.msra.mxu3 %v726_v59  ;;  %v706_v60 = vpop.f32.mrf.mxu2 }
  0xbd   : > { %938 = vmatpush.msrb.mxu2 %v706_v60 }
  0xbe   : > { %1117 = vmatpush.msrb.mxu3 %v1029_v42 }
  0xbf   : > { %1094 = vmatpush.msra.mxu2 %v1028_v33 }
 0x121   : > { %v779_v0 = vpop.f32.mrf.mxu1 }
 0x122   : > { %v835_v1 = vmul.f32 0.35355338, %v779_v0 }
 0x124   : > { %v841_v2 = vsel %vm729_vm1, %v835_v1, -inf }
 0x126   : > { %v753_v61 = vpop.f32.mrf.mxu0 }
 0x127   : > { %v834_v62 = vmul.f32 0.35355338, %v753_v61 }
 0x129   : > { %v838_v63 = vsel %vm729_vm1, %v834_v62, -inf }
 0x12a   : > { %839 = vmax.xlane.f32.xlu1 %v838_v63 }
 0x132   : > { %842 = vmax.xlane.f32.xlu1 %v841_v2 }
 0x138   : > { %v831_v6 = vpop.f32.mrf.mxu3 }
 0x139   : > { %v837_v7 = vmul.f32 0.35355338, %v831_v6 }
 0x13a   : > { %v805_v3 = vpop.f32.mrf.mxu2 }
 0x13b   : > { %v836_v4 = vmul.f32 0.35355338, %v805_v3  ;;  %v847_v8 = vsel %vm729_vm1, %v837_v7, -inf }
 0x13d   : > { %v844_v5 = vsel %vm729_vm1, %v836_v4, -inf }
 0x13e   : > { %845 = vmax.xlane.f32.xlu0 %v844_v5 }
 0x146   : > { %848 = vmax.xlane.f32.xlu0 %v847_v8 }
 0x19d   : > { %v840_v9 = vpop.xlane.xlu1 %839 }
 0x19e   : > { %v850_v10 = vsub.f32 %v834_v62, %v840_v9 }
 0x1a0   : > { %v854_v11 = vmul.f32 1.442695, %v850_v10 }
 0x1a2   : > { %1452 = vpow2.f32 %v854_v11 }
 0x1a5   : > { %v843_v12 = vpop.xlane.xlu1 %842 }
 0x1a6   : > { %v851_v14 = vsub.f32 %v835_v1, %v843_v12 }
 0x1a8   : > { %v1453_v15 = vpop.eup %1452  ;;  %v856_v16 = vmul.f32 1.442695, %v851_v14 }
 0x1a9   : > { %1391 = vmatmul.msk.f32.vlgmr.msra.gmra.mxu0 %vm729_vm1, %v1453_v15  ;;  %v862_v17 = vsel %vm729_vm1, %v1453_v15, 0.0 }
 0x1aa   : > { %1454 = vpow2.f32 %v856_v16  ;;  %863 = vadd.xlane.f32.xlu0 %v862_v17 }
 0x1b0   : > { %v1455_v18 = vpop.eup %1454 }
 0x1b1   : > { %v846_v19 = vpop.xlane.xlu0 %845  ;;  %1392 = vmatmul.msk.f32.vlgmr.msrb.gmra.mxu1 %vm729_vm1, %v1455_v18  ;;  %v865_v20 = vsel %vm729_vm1, %v1455_v18, 0.0 }
 0x1b2   : > { %v852_v21 = vsub.f32 %v836_v4, %v846_v19  ;;  %866 = vadd.xlane.f32.xlu1 %v865_v20 }
 0x1b4   : > { %v858_v22 = vmul.f32 1.442695, %v852_v21 }
 0x1b6   : > { %1456 = vpow2.f32 %v858_v22 }
 0x1b9   : > { %v849_v23 = vpop.xlane.xlu0 %848 }
 0x1ba   : > { %v853_v24 = vsub.f32 %v837_v7, %v849_v23 }
 0x1bc   : > { %v1457_v25 = vpop.eup %1456  ;;  %v860_v26 = vmul.f32 1.442695, %v853_v24 }
 0x1bd   : > { %1393 = vmatmul.msk.f32.vlgmr.msrb.gmra.mxu2 %vm729_vm1, %v1457_v25  ;;  %v868_v27 = vsel %vm729_vm1, %v1457_v25, 0.0 }
 0x1be   : > { %1458 = vpow2.f32 %v860_v26  ;;  %869 = vadd.xlane.f32.xlu2 %v868_v27 }
 0x1c4   : > { %v1459_v28 = vpop.eup %1458 }
 0x1c5   : > { %1394 = vmatmul.msk.f32.vlgmr.msra.gmra.mxu3 %vm729_vm1, %v1459_v28  ;;  %v871_v29 = vsel %vm729_vm1, %v1459_v28, 0.0 }
 0x1c6   : > { %872 = vadd.xlane.f32.xlu2 %v871_v29 }
 0x21d   : > { %v864_v32 = vpop.xlane.xlu0 %863 }
 0x21e   : > { %1460 = vrcp.f32 %v864_v32  ;;  %v977_v38 = vand.u32 2147483648, %v864_v32  ;;  %v975_v40 = vand.u32 2147483647, %v864_v32  ;;  %vm971_vm3 = vweird.f32 %v864_v32 }
 0x220   : > { %v978_v44 = vor.u32 1.1754944e-38, %v977_v38  ;;  %vm976_vm5 = vcmp.eq.f32.partialorder %v975_v40, 8.507059e+37 }
 0x224   : > { %v1461_v34 = vpop.eup %1460 }
 0x225   : > { %v967_v35 = vmul.f32 %v1461_v34, %v864_v32  ;;  %v867_v36 = vpop.xlane.xlu1 %866  ;;  %vm972_vm2 = vweird.f32 %v1461_v34 }
 0x226   : > { %1462 = vrcp.f32 %v867_v36  ;;  %vm973_vm4 = vmor %vm971_vm3, %vm972_vm2  ;;  %v894_v47 = vpop.f32.mrf.mxu0  ;;  %v992_v51 = vand.u32 2147483648, %v867_v36  ;;  %v990_v53 = vand.u32 2147483647, %v867_v36  ;;  %vm986_vm7 = vweird.f32 %v867_v36 }
 0x227   : > { %v968_v37 = vsub.f32 1.0, %v967_v35 }
 0x228   : > { %v993_v56 = vor.u32 1.1754944e-38, %v992_v51  ;;  %vm991_vm9 = vcmp.eq.f32.partialorder %v990_v53, 8.507059e+37 }
 0x229   : > { %v969_v39 = vmul.f32 %v1461_v34, %v968_v37 }
 0x22b   : > { %v970_v41 = vadd.f32 %v1461_v34, %v969_v39 }
 0x22c   : > { %v1463_v43 = vpop.eup %1462 }
 0x22d   : > { %v982_v45 = vmul.f32 %v1463_v43, %v867_v36  ;;  %v974_v46 = vsel %vm973_vm4, %v1461_v34, %v970_v41  ;;  %vm987_vm6 = vweird.f32 %v1463_v43  ;;  %v1542_v36 = vmov 32.0  }
 0x22e   : > { %v979_v48 = vsel %vm976_vm5, %v978_v44, %v974_v46  ;;  %vm988_vm8 = vmor %vm986_vm7, %vm987_vm6  ;;  %v917_v58 = vpop.f32.mrf.mxu1 }
 0x22f   : > { %v983_v49 = vsub.f32 1.0, %v982_v45  ;;  %v980_v50 = vmul.f32 %v979_v48, %v894_v47  ;;  %v1172_v47 = vld [vmem:[%s1982_s7 + $0x18] sm:$0xff]  ;;  %v1171_v48 = vld [vmem:[%s1982_s7 + $0x10] sm:$0xff] }
 0x230   : > { %1192 = vmatpush.msra.mxu0 %v1172_v47  ;;  %v1450_v47 = vld [vmem:[%s1986_s11] ss:$0 sm:$0xff] }
 0x231   : > { %v984_v52 = vmul.f32 %v1463_v43, %v983_v49  ;;  %v870_v54 = vpop.xlane.xlu2 %869  ;;  %1395 = vmatmul.msk.f32.vlgmr.msrb.gmra.mxu0 %vm729_vm1, %v980_v50  ;;  %v1170_v49 = vld [vmem:[%s1982_s7 + $0x8] sm:$0xff]  ;;  %v1169_v50 = vld [vmem:[%s1982_s7] sm:$0xff] }
 0x232   : > { %1464 = vrcp.f32 %v870_v54  ;;  %v1007_v1 = vand.u32 2147483648, %v870_v54  ;;  %v1005_v3 = vand.u32 2147483647, %v870_v54  ;;  %vm1001_vm11 = vweird.f32 %v870_v54  ;;  %1193 = vmatpush.msra.mxu0 %v1171_v48 }
 0x233   : > { %v985_v55 = vadd.f32 %v1463_v43, %v984_v52 }
 0x234   : > { %v1008_v6 = vor.u32 1.1754944e-38, %v1007_v1  ;;  %vm1006_vm13 = vcmp.eq.f32.partialorder %v1005_v3, 8.507059e+37  ;;  %1194 = vmatpush.msra.mxu0 %v1170_v49  ;;  %v1226_v3 = vld [vmem:[%s1984_s9 + $0x30] sm:$0xff]  ;;  %v1451_v49 = vld [vmem:[%s1987_s12] ss:$0 sm:$0xff] }
 0x235   : > { %v989_v57 = vsel %vm988_vm8, %v1463_v43, %v985_v55 }
 0x236   : > { %v994_v59 = vsel %vm991_vm9, %v993_v56, %v989_v57  ;;  %1195 = vmatpush.msra.mxu0 %v1169_v50 }
 0x237   : > { %v995_v60 = vmul.f32 %v994_v59, %v917_v58 }
 0x238   : > { %v1465_v61 = vpop.eup %1464 }
 0x239   : > { %v997_v62 = vmul.f32 %v1465_v61, %v870_v54  ;;  %v873_v63 = vpop.xlane.xlu2 %872  ;;  %1396 = vmatmul.msk.f32.vlgmr.msra.gmra.mxu1 %vm729_vm1, %v995_v60  ;;  %vm1002_vm10 = vweird.f32 %v1465_v61  ;;  %v1446_v60 = vld [vmem:[%s1980_s5] ss:$0 sm:$0xff] }
 0x23a   : > { %1466 = vrcp.f32 %v873_v63  ;;  %vm1003_vm12 = vmor %vm1001_vm11, %vm1002_vm10  ;;  %v1022_v14 = vand.u32 2147483648, %v873_v63  ;;  %v1020_v16 = vand.u32 2147483647, %v873_v63  ;;  %vm1016_vm15 = vweird.f32 %v873_v63 }
 0x23b   : > { %v998_v0 = vsub.f32 1.0, %v997_v62  ;;  %1468 = vrcp.f32 %v1542_v36  ;;  %vm1232_vm11 = vcmask 523264  }
 0x23c   : > { %v1023_v18 = vor.u32 1.1754944e-38, %v1022_v14  ;;  %vm1021_vm3 = vcmp.eq.f32.partialorder %v1020_v16, 8.507059e+37 }
 0x23d   : > { %v999_v2 = vmul.f32 %v1465_v61, %v998_v0 }
 0x23f   : > { %v1000_v4 = vadd.f32 %v1465_v61, %v999_v2  ;;  %v1227_v2 = vld [vmem:[%s1984_s9 + $0x38] sm:$0xff] }
 0x240   : > { %v1467_v5 = vpop.eup %1466  ;;  %v940_v9 = vpop.f32.mrf.mxu2  ;;  %1244 = vmatpush.msrb.mxu1 %v1227_v2 }
 0x241   : > { %v1012_v7 = vmul.f32 %v1467_v5, %v873_v63  ;;  %v1004_v8 = vsel %vm1003_vm12, %v1465_v61, %v1000_v4  ;;  %vm1017_vm14 = vweird.f32 %v1467_v5  ;;  %v1469_v37 = vpop.eup %1468  ;;  %v1447_v63 = vld [vmem:[%s1981_s6] ss:$0 sm:$0xff]  ;;  %v1225_v4 = vld [vmem:[%s1984_s9 + $0x28] sm:$0xff] }
 0x242   : > { %v1009_v10 = vsel %vm1006_vm13, %v1008_v6, %v1004_v8  ;;  %vm1018_vm2 = vmor %vm1016_vm15, %vm1017_vm14  ;;  %v1136_v38 = vmul.f32 32.0, %v1469_v37  ;;  %1245 = vmatpush.msrb.mxu1 %v1226_v3  ;;  %v1223_v6 = vld [vmem:[%s1984_s9 + $0x18] sm:$0xff]  ;;  %v1448_v8 = vld [vmem:[%s1983_s8] ss:$0 sm:$0xff] }
 0x243   : > { %v1013_v11 = vsub.f32 1.0, %v1012_v7  ;;  %v1010_v12 = vmul.f32 %v1009_v10, %v940_v9  ;;  %v1222_v7 = vld [vmem:[%s1984_s9 + $0x10] sm:$0xff]  ;;  %v1221_v9 = vld [vmem:[%s1984_s9 + $0x8] sm:$0xff]  ;;  %v1220_v10 = vld [vmem:[%s1984_s9] sm:$0xff] }
 0x244   : > { %v1137_v39 = vsub.f32 1.0, %v1136_v38  ;;  %1246 = vmatpush.msrb.mxu1 %v1225_v4 }
 0x245   : > { %1397 = vmatmul.msk.f32.vlgmr.msra.gmra.mxu2 %vm729_vm1, %v1010_v12  ;;  %v1014_v15 = vmul.f32 %v1467_v5, %v1013_v11 }
 0x246   : > { %v1138_v40 = vmul.f32 %v1469_v37, %v1137_v39 }
 0x247   : > { %v1015_v17 = vadd.f32 %v1467_v5, %v1014_v15 }
 0x248   : > { %v963_v20 = vpop.f32.mrf.mxu3  ;;  %v1139_v41 = vadd.f32 %v1469_v37, %v1138_v40 }
 0x249   : > { %v1019_v19 = vsel %vm1018_vm2, %v1467_v5, %v1015_v17  ;;  %v1224_v5 = vld [vmem:[%s1984_s9 + $0x20] sm:$0xff] }
 0x24a   : > { %v1024_v21 = vsel %vm1021_vm3, %v1023_v18, %v1019_v19  ;;  %1247 = vmatpush.msrb.mxu1 %v1224_v5 }
 0x24b   : > { %v1025_v22 = vmul.f32 %v1024_v21, %v963_v20 }
 0x24c   : > { %1248 = vmatpush.msrb.mxu1 %v1223_v6 }
 0x24d   : > { %1398 = vmatmul.msk.f32.vlgmr.msrb.gmra.mxu3 %vm729_vm1, %v1025_v22  ;;  %vm1140_vm1 = vweird.f32 %v1469_v37 }
 0x24e   : > { %v1878_v42 = vsel %vm1140_vm1, %v1469_v37, %v1139_v41  ;;  %1249 = vmatpush.msrb.mxu1 %v1222_v7 }
 0x250   : > { %1250 = vmatpush.msrb.mxu1 %v1221_v9 }
 0x252   : > { %1251 = vmatpush.msrb.mxu1 %v1220_v10 }
 0x2ae   : > { %v1050_v24 = vpop.f32.mrf.mxu0 }
 0x2af   : > { %v1122_v27 = vsel %vm453_vm0, %v1050_v24, 0.0 }
 0x2b6   : > { %v1073_v23 = vpop.f32.mrf.mxu1 }
 0x2b7   : > { %v1123_v26 = vsel %vm453_vm0, %v1073_v23, 0.0 }
 0x2b8   : > { %v1124_v29 = vadd.f32 %v1123_v26, %v1122_v27 }
 0x2c8   : > { %v1096_v25 = vpop.f32.mrf.mxu2 }
 0x2c9   : > { %v1125_v28 = vsel %vm453_vm0, %v1096_v25, 0.0 }
 0x2ca   : > { %v1126_v30 = vadd.f32 %v1125_v28, %v1124_v29  ;;  %v1449_v28 = vld [vmem:[%s1985_s10] ss:$0 sm:$0xff] }
 0x2d0   : > { %v1119_v31 = vpop.f32.mrf.mxu3 }
 0x2d1   : > { %v1127_v32 = vsel %vm453_vm0, %v1119_v31, 0.0 }
 0x2d2   : > { %v1128_v33 = vadd.f32 %v1127_v32, %v1126_v30 }
 0x2d4   : > { %v1129_v34 = vadd.f32 %v1128_v33, %v1705_v13 }
 0x2d6   : > { %v1132_v35 = vsel %vm453_vm0, %v1129_v34, 0.0 }
 0x2d7   : > { %1133 = vadd.xlane.f32.xlu2 %v1132_v35 }
 0x34a   : > { %v1134_v43 = vpop.xlane.xlu2 %1133 }
 0x34b   : > { %v1142_v44 = vmul.f32 %v1878_v42, %v1134_v43 }
 0x34d   : > { %v1143_v45 = vsub.f32 %v1129_v34, %v1142_v44 }
 0x34f   : > { %v1144_v46 = vmul.f32 %v1143_v45, %v1143_v45 }
 0x351   : > { %v1145_v13 = vsel %vm453_vm0, %v1144_v46, 0.0 }
 0x352   : > { %1146 = vadd.xlane.f32.xlu0 %v1145_v13 }
 0x3c5   : > { %v1147_v51 = vpop.xlane.xlu0 %1146 }
 0x3c6   : > { %v1148_v52 = vmul.f32 %v1147_v51, %v1878_v42 }
 0x3c8   : > { %v1149_v53 = vadd.f32 1e-05, %v1148_v52 }
 0x3ca   : > { %1470 = vrsqrt.f32 %v1149_v53  ;;  %vm1156_vm5 = vweird.f32 %v1149_v53 }
 0x3d0   : > { %v1471_v54 = vpop.eup %1470 }
 0x3d1   : > { %v1151_v55 = vmul.f32 %v1471_v54, %v1149_v53  ;;  %vm1157_vm4 = vweird.f32 %v1471_v54 }
 0x3d2   : > { %vm1158_vm6 = vmor %vm1156_vm5, %vm1157_vm4 }
 0x3d3   : > { %v1152_v56 = vmul.f32 %v1471_v54, %v1151_v55 }
 0x3d5   : > { %v1153_v57 = vmul.f32 0.5, %v1152_v56 }
 0x3d7   : > { %v1154_v58 = vsub.f32 1.5, %v1153_v57 }
 0x3d9   : > { %v1155_v59 = vmul.f32 %v1471_v54, %v1154_v58 }
 0x3db   : > { %v1159_v61 = vsel %vm1158_vm6, %v1471_v54, %v1155_v59 }
 0x3dc   : > { %v1160_v62 = vmul.f32 %v1159_v61, %v1143_v45 }
 0x3de   : > { %v1164_v0 = vmul.f32 %v1446_v60, %v1160_v62 }
 0x3e0   : > { %v1168_v1 = vadd.f32 %v1447_v63, %v1164_v0 }
 0x3e2   : > { %1399 = vmatmul.msk.f32.vlgmr.msra.gmra.mxu0 %vm453_vm0, %v1168_v1 }
 0x45f   : > { %v1197_v11 = vpop.f32.mrf.mxu0 }
 0x460   : > { %v1198_v12 = vadd.f32 %v1448_v8, %v1197_v11 }
 0x462   : > { %v1400_v14 = vmul.f32 -1.442695, %v1198_v12 }
 0x464   : > { %1472 = vpow2.f32 %v1400_v14 }
 0x46a   : > { %v1473_v15 = vpop.eup %1472 }
 0x46b   : > { %v1203_v16 = vadd.f32 1.0, %v1473_v15 }
 0x46d   : > { %1474 = vrcp.f32 %v1203_v16  ;;  %v1215_v20 = vand.u32 2147483648, %v1203_v16  ;;  %v1213_v22 = vand.u32 2147483647, %v1203_v16  ;;  %vm1209_vm8 = vweird.f32 %v1203_v16 }
 0x46f   : > { %v1216_v24 = vor.u32 1.1754944e-38, %v1215_v20  ;;  %vm1214_vm10 = vcmp.eq.f32.partialorder %v1213_v22, 8.507059e+37 }
 0x473   : > { %v1475_v17 = vpop.eup %1474 }
 0x474   : > { %v1205_v18 = vmul.f32 %v1475_v17, %v1203_v16  ;;  %vm1210_vm7 = vweird.f32 %v1475_v17 }
 0x475   : > { %vm1211_vm9 = vmor %vm1209_vm8, %vm1210_vm7 }
 0x476   : > { %v1206_v19 = vsub.f32 1.0, %v1205_v18 }
 0x478   : > { %v1207_v21 = vmul.f32 %v1475_v17, %v1206_v19 }
 0x47a   : > { %v1208_v23 = vadd.f32 %v1475_v17, %v1207_v21 }
 0x47c   : > { %v1212_v25 = vsel %vm1211_vm9, %v1475_v17, %v1208_v23 }
 0x47d   : > { %v1217_v26 = vsel %vm1214_vm10, %v1216_v24, %v1212_v25 }
 0x47e   : > { %v1219_v27 = vmul.f32 %v1217_v26, %v1198_v12 }
 0x480   : > { %1401 = vmatmul.msk.f32.vlgmr.msrb.gmra.mxu1 %vm1232_vm11, %v1219_v27 }
 0x4fd   : > { %v1253_v29 = vpop.f32.mrf.mxu1 }
 0x4fe   : > { %v1254_v30 = vadd.f32 %v1449_v28, %v1253_v29 }
 0x500   : > { %v1256_v31 = vadd.f32 %v1254_v30, %v1168_v1 }
 0x502   : > { %v1259_v32 = vsel %vm453_vm0, %v1256_v31, 0.0 }
 0x503   : > { %1260 = vadd.xlane.f32.xlu1 %v1259_v32 }
 0x576   : > { %v1261_v33 = vpop.xlane.xlu1 %1260 }
 0x577   : > { %v1262_v34 = vmul.f32 %v1261_v33, %v1878_v42 }
 0x579   : > { %v1263_v35 = vsub.f32 %v1256_v31, %v1262_v34 }
 0x57b   : > { %v1264_v36 = vmul.f32 %v1263_v35, %v1263_v35 }
 0x57d   : > { %v1265_v37 = vsel %vm453_vm0, %v1264_v36, 0.0 }
 0x57e   : > { %1266 = vadd.xlane.f32.xlu2 %v1265_v37 }
 0x5f1   : > { %v1267_v38 = vpop.xlane.xlu2 %1266 }
 0x5f2   : > { %v1268_v39 = vmul.f32 %v1267_v38, %v1878_v42 }
 0x5f4   : > { %v1269_v40 = vadd.f32 1e-05, %v1268_v39 }
 0x5f6   : > { %1476 = vrsqrt.f32 %v1269_v40  ;;  %vm1276_vm13 = vweird.f32 %v1269_v40 }
 0x5fc   : > { %v1477_v41 = vpop.eup %1476 }
 0x5fd   : > { %v1271_v43 = vmul.f32 %v1477_v41, %v1269_v40  ;;  %vm1277_vm12 = vweird.f32 %v1477_v41 }
 0x5fe   : > { %vm1278_vm14 = vmor %vm1276_vm13, %vm1277_vm12 }
 0x5ff   : > { %v1272_v44 = vmul.f32 %v1477_v41, %v1271_v43 }
 0x601   : > { %v1273_v45 = vmul.f32 0.5, %v1272_v44 }
 0x603   : > { %v1274_v46 = vsub.f32 1.5, %v1273_v45 }
 0x605   : > { %v1275_v13 = vmul.f32 %v1477_v41, %v1274_v46 }
 0x607   : > { %v1279_v42 = vsel %vm1278_vm14, %v1477_v41, %v1275_v13 }
 0x608   : > { %v1280_v48 = vmul.f32 %v1279_v42, %v1263_v35 }
 0x60a   : > { %v1284_v50 = vmul.f32 %v1450_v47, %v1280_v48 }
 0x60c   : > { %v1288_v51 = vadd.f32 %v1451_v49, %v1284_v50 }
 0x60e   : > { %1289 = vst.msk [vmem:[%s431_s20] sm:$0xff] %vm453_vm0, %v1288_v51 }
 0x60f   : > { %1505 = shalt.err (!%p1502_p3)
}
 0x610   : > { %1406 = dma.vmem_to_hbm [thread:$0]  (%p1651_p5), %s1304_s29, 128, %s1306_s0, %s1291_s22  }
 0x611 PF: > { %p1412_p4 = scmp.ge.s32.totalorder %s1540_s28, 2  ;;  %s1317_s27 = sand.u32 1, %s1528_s25  }
 0x612   : > { %s1318_s17 = scalar_lea.sflag [#allocation3], %s1317_s27 }
 0x613   : > { %p1409_p7 = pnand %p1412_p4, %p1655_p6 }
 0x615   : > { %p1410_p8 = pneg %p1409_p7 }
 0x617   : > { %1523 = dma.done.wait (%p1410_p8), %s1318_s17, 128  }
 0x618   : > { %1525 = vsyncadd (%p1410_p8), %s1318_s17, 4294967168  ;;  %s1999_s28 = sld [smem:[#allocation6_spill]]  ;;  %s2002_s25 = smov %s1532_s26 }
 0x619   : > { %s2000_s20 = sld [smem:[#allocation5_spill]] }
 0x61a   : > { %s2001_s27 = sld [smem:[#allocation7_spill]] }
 0x61e   : > { %p23_p9 = scmp.ge.s32.totalorder %s1999_s28, 4  }
 0x61f   : > { %s2003_s26 = smov %s2000_s20 }
 0x620   :  { %25 = sbr.rel (!%p23_p9) target bundleno = 5 (0x5), region = 107 }
 0x625   :  { %1324 = vsyncpa [#allocation3], 1 }
 0x626   :  { %1326 = vsyncpa [#allocation3 + $0x1], 1 }

</bundles_post_ra>
